<compile_context>
chip_gen: v7x
topology: tpu7x:2x2x1
jax: 0.10.0
libtpu: 0.0.40
codegen_flags: <defaults>
</compile_context>

<pallas_src>
import jax
import jax.numpy as jnp
from jax.experimental import pallas as pl
from jax.experimental.pallas import tpu as pltpu

LANE = 128
BATCH_TILE = 256  # multiple of 16 (bf16 sublane packing); large enough to amortize grid-step overhead


def _round_up(x: int, m: int) -> int:
    return ((x + m - 1) // m) * m


def _pad2d(a, rows: int, cols: int):
    r, c = a.shape
    return jnp.pad(a, ((0, rows - r), (0, cols - c)))


def _mlp_softmax_kernel(x_ref,
                        w1_ref, b1_ref,
                        w2_ref, b2_ref,
                        w3_ref, b3_ref,
                        w4_ref, b4_ref,
                        out_ref):
    # x is staged as bf16 by the wrapper; matmuls accumulate in f32 on the MXU.
    x = x_ref[...]

    h = jnp.dot(x, w1_ref[...], preferred_element_type=jnp.float32) + b1_ref[...]
    h = jnp.maximum(h, 0.0).astype(jnp.bfloat16)

    h = jnp.dot(h, w2_ref[...], preferred_element_type=jnp.float32) + b2_ref[...]
    h = jnp.maximum(h, 0.0).astype(jnp.bfloat16)

    h = jnp.dot(h, w3_ref[...], preferred_element_type=jnp.float32) + b3_ref[...]
    h = jnp.maximum(h, 0.0).astype(jnp.bfloat16)

    # Padded class columns of w4 are exact zeros and b4 carries -1e30 there (folded in the
    # wrapper), so those logits are ~-1e30 and exp() underflows them to 0 below.
    logits = jnp.dot(h, w4_ref[...], preferred_element_type=jnp.float32) + b4_ref[...]

    # Numerically stable softmax over dim=-1 (pad columns contribute exactly 0).
    m = jnp.max(logits, axis=-1, keepdims=True)
    e = jnp.exp(logits - m)
    denom = jnp.sum(e, axis=-1, keepdims=True)
    r = pl.reciprocal(denom, approx=True)
    r = r * (2.0 - denom * r)  # one Newton-Raphson step -> full f32 accuracy
    out_ref[...] = (e * r).astype(out_ref.dtype)


def _resident_spec(shape):
    # Constant index map -> block is VMEM-resident across all grid steps. Single-buffer it:
    # it is never re-fetched, so depth-2 pipelining would only waste VMEM (v7x: 64 MiB).
    try:
        return pl.BlockSpec(shape, lambda i: (0, 0), pipeline_mode=pl.Buffered(1))
    except TypeError:  # older jax without pipeline_mode on BlockSpec
        return pl.BlockSpec(shape, lambda i: (0, 0))


def nn_classifier_forward(x, params):
    """Forward pass of NNClassifier: softmax(MLP(x)), computed in one Pallas kernel."""
    (w1, b1), (w2, b2), (w3, b3), (w4, b4) = params
    batch, input_dim = x.shape
    n_classes = w4.shape[1]

    # Lane-pad every feature dim to a multiple of 128.
    d0 = _round_up(input_dim, LANE)
    d1 = _round_up(w1.shape[1], LANE)
    d2 = _round_up(w2.shape[1], LANE)
    d3 = _round_up(w3.shape[1], LANE)
    nc = _round_up(n_classes, LANE)

    # Batch tile: large (overhead-amortized) for big batches; sublane-rounded for small ones
    # so we don't pad tiny batches all the way to BATCH_TILE rows.
    tb = BATCH_TILE if batch >= BATCH_TILE else _round_up(max(batch, 1), 16)
    bp = _round_up(max(batch, 1), tb)
    n_tiles = bp // tb

    # Stage x as bf16 (the matmul input dtype) fused with the pad: halves the streamed
    # HBM->VMEM bytes for x and the host-side pad pass.
    xp = _pad2d(x.astype(jnp.bfloat16), bp, d0)
    w1p = _pad2d(w1, d0, d1).astype(jnp.bfloat16)
    w2p = _pad2d(w2, d1, d2).astype(jnp.bfloat16)
    w3p = _pad2d(w3, d2, d3).astype(jnp.bfloat16)
    w4p = _pad2d(w4, d3, nc).astype(jnp.bfloat16)
    b1p = _pad2d(jnp.asarray(b1).reshape(1, -1), 1, d1).astype(jnp.float32)
    b2p = _pad2d(jnp.asarray(b2).reshape(1, -1), 1, d2).astype(jnp.float32)
    b3p = _pad2d(jnp.asarray(b3).reshape(1, -1), 1, d3).astype(jnp.float32)
    # Fold the padded-class mask into the final bias: W4 pad columns are exact zeros, so
    # logit = 0 + (-1e30) in those columns and exp underflows to 0 inside the kernel.
    b4p = jnp.pad(jnp.asarray(b4).reshape(1, -1).astype(jnp.float32),
                  ((0, 0), (0, nc - n_classes)), constant_values=-1e30)

    # Batch-tiled activation/output specs; weights/biases stay VMEM-resident.
    x_spec = pl.BlockSpec((tb, d0), lambda i: (i, 0))
    out_spec = pl.BlockSpec((tb, nc), lambda i: (i, 0))

    flops = 2 * bp * (d0 * d1 + d1 * d2 + d2 * d3 + d3 * nc)
    bytes_accessed = (
        xp.size * 2
        + (w1p.size + w2p.size + w3p.size + w4p.size) * 2
        + (b1p.size + b2p.size + b3p.size + b4p.size) * 4
        + bp * nc * 4
    )
    cost = pl.CostEstimate(flops=flops,
                           transcendentals=bp * nc,
                           bytes_accessed=bytes_accessed)

    # Explicit scoped-VMEM budget: resident weights/biases (allow 2x slack), double-buffered
    # x/out tiles, and f32 activation temps, with headroom; capped below v7x physical VMEM.
    weight_bytes = (w1p.size + w2p.size + w3p.size + w4p.size) * 2
    bias_bytes = (b1p.size + b2p.size + b3p.size + b4p.size) * 4
    tile_bytes = tb * d0 * 2 + tb * nc * 4
    act_bytes = tb * max(d0, d1, d2, d3, nc) * 4
    vmem_need = 2 * weight_bytes + 2 * bias_bytes + 4 * tile_bytes + 8 * act_bytes
    vmem_limit = int(min(max(vmem_need, 32 << 20), 60 << 20))

    probs_padded = pl.pallas_call(
        _mlp_softmax_kernel,
        out_shape=jax.ShapeDtypeStruct((bp, nc), jnp.float32),
        grid_spec=pltpu.PrefetchScalarGridSpec(
            num_scalar_prefetch=0,
            grid=(n_tiles,),
            in_specs=[
                x_spec,
                _resident_spec((d0, d1)), _resident_spec((1, d1)),
                _resident_spec((d1, d2)), _resident_spec((1, d2)),
                _resident_spec((d2, d3)), _resident_spec((1, d3)),
                _resident_spec((d3, nc)), _resident_spec((1, nc)),
            ],
            out_specs=out_spec,
        ),
        compiler_params=pltpu.CompilerParams(
            dimension_semantics=("parallel",),
            vmem_limit_bytes=vmem_limit,
        ),
        cost_estimate=cost,
    )(xp, w1p, b1p, w2p, b2p, w3p, b3p, w4p, b4p)

    # Drop batch/class padding (padded class columns are exactly 0 anyway).
    return probs_padded[:batch, :n_classes]


def _xavier_uniform(key, fan_in, fan_out, dtype=jnp.float32):
    # Matches nn.init.xavier_uniform_ (gain=1.0)
    limit = jnp.sqrt(6.0 / (fan_in + fan_out))
    return jax.random.uniform(key, (fan_in, fan_out), dtype=dtype,
                              minval=-limit, maxval=limit)


def make_params(key, input_dim, n_classes, layer_sizes=(200, 200, 200)):
    """Deterministic parameter init mirroring NNClassifier.__init__ + init_parameters().

    Weights: xavier uniform, stored (in_features, out_features).
    Biases:  zeros, stored (1, out_features).
    """
    dims_in = (input_dim,) + tuple(layer_sizes)
    dims_out = tuple(layer_sizes) + (n_classes,)
    params = []
    for fi, fo in zip(dims_in, dims_out):
        key, sub = jax.random.split(key)
        w = _xavier_uniform(sub, fi, fo)
        b = jnp.zeros((1, fo), dtype=jnp.float32)
        params.append((w, b))
    return params


def _reference_forward(x, params):
    """Pure-JAX reference (f32) of softmax(MLP(x)) for a correctness check."""
    h = x.astype(jnp.float32)
    for i, (w, b) in enumerate(params):
        h = h @ w.astype(jnp.float32) + b
        if i < len(params) - 1:
            h = jnp.maximum(h, 0.0)
    return jax.nn.softmax(h, axis=-1)


# TODO(synk): fit() / Adam training loop and numpy host helpers (predict, predict_proba,
# classify, classification_entropy) are host-side / training utilities, not kernel work.

if __name__ == "__main__":
    # Small shapes consistent with the module's forward:
    # inputs (batch, input_dim); output probabilities (batch, n_classes).
    batch = 8
    input_dim = 32
    n_classes = 16
    layer_sizes = (64, 64, 64)

    key = jax.random.PRNGKey(0)
    key, xk = jax.random.split(key)
    x = jax.random.normal(xk, (batch, input_dim), dtype=jnp.float32)

    params = make_params(key, input_dim, n_classes, layer_sizes)

    probs = nn_classifier_forward(x, params)
    probs = jax.block_until_ready(probs)

    # Sanity: correct shape, rows sum to 1, and matches the f32 reference to bf16-matmul tolerance.
    assert probs.shape == (batch, n_classes)
    row_sums = jnp.sum(probs, axis=-1)
    assert bool(jnp.all(jnp.abs(row_sums - 1.0) < 1e-4))

    ref = _reference_forward(x, params)
    assert bool(jnp.max(jnp.abs(probs - ref)) < 2e-2)  # bf16 matmul inputs, f32 accumulation

    print("KERNEL_OK")
</pallas_src>

<mosaic_0001>
module attributes {stable_mosaic.version = 11 : i64} {
  func.func @_mlp_softmax_kernel(%arg0: i32, %arg1: memref<16x128xbf16, #tpu.memory_space<vmem>>, %arg2: memref<128x128xbf16, #tpu.memory_space<vmem>>, %arg3: memref<1x128xf32, #tpu.memory_space<vmem>>, %arg4: memref<128x128xbf16, #tpu.memory_space<vmem>>, %arg5: memref<1x128xf32, #tpu.memory_space<vmem>>, %arg6: memref<128x128xbf16, #tpu.memory_space<vmem>>, %arg7: memref<1x128xf32, #tpu.memory_space<vmem>>, %arg8: memref<128x128xbf16, #tpu.memory_space<vmem>>, %arg9: memref<1x128xf32, #tpu.memory_space<vmem>>, %arg10: memref<16x128xf32, #tpu.memory_space<vmem>>) attributes {dimension_semantics = [#tpu.dimension_semantics<parallel>], iteration_bounds = array<i64: 1>, scalar_prefetch = 0 : i64, scratch_operands = 0 : i64, tpu.core_type = #tpu.core_type<tc>, window_params = [{transform_indices = @transform_0, window_bounds = array<i64: 16, 128>}, {pipeline_mode = #tpu.pipeline_mode<synchronous>, transform_indices = @transform_1, window_bounds = array<i64: 128, 128>}, {pipeline_mode = #tpu.pipeline_mode<synchronous>, transform_indices = @transform_2, window_bounds = array<i64: 1, 128>}, {pipeline_mode = #tpu.pipeline_mode<synchronous>, transform_indices = @transform_3, window_bounds = array<i64: 128, 128>}, {pipeline_mode = #tpu.pipeline_mode<synchronous>, transform_indices = @transform_4, window_bounds = array<i64: 1, 128>}, {pipeline_mode = #tpu.pipeline_mode<synchronous>, transform_indices = @transform_5, window_bounds = array<i64: 128, 128>}, {pipeline_mode = #tpu.pipeline_mode<synchronous>, transform_indices = @transform_6, window_bounds = array<i64: 1, 128>}, {pipeline_mode = #tpu.pipeline_mode<synchronous>, transform_indices = @transform_7, window_bounds = array<i64: 128, 128>}, {pipeline_mode = #tpu.pipeline_mode<synchronous>, transform_indices = @transform_8, window_bounds = array<i64: 1, 128>}, {transform_indices = @transform_9, window_bounds = array<i64: 16, 128>}]} {
    %c0 = arith.constant 0 : index
    %c0_0 = arith.constant 0 : index
    %0 = vector.load %arg1[%c0, %c0_0] : memref<16x128xbf16, #tpu.memory_space<vmem>>, vector<16x128xbf16>
    %c0_1 = arith.constant 0 : index
    %c0_2 = arith.constant 0 : index
    %1 = vector.load %arg2[%c0_1, %c0_2] : memref<128x128xbf16, #tpu.memory_space<vmem>>, vector<128x128xbf16>
    %cst = arith.constant dense<0.000000e+00> : vector<16x128xf32>
    %2 = tpu.matmul %0, %1, %cst {dimension_numbers = #tpu.dot_dimension_numbers<[1], [0], [0], [1], [0, 0, 1, 1], [], []>} : vector<16x128xbf16>, vector<128x128xbf16>, vector<16x128xf32> -> vector<16x128xf32>
    %c0_3 = arith.constant 0 : index
    %c0_4 = arith.constant 0 : index
    %3 = vector.load %arg3[%c0_3, %c0_4] : memref<1x128xf32, #tpu.memory_space<vmem>>, vector<1x128xf32>
    %4 = vector.broadcast %3 : vector<1x128xf32> to vector<16x128xf32>
    %5 = arith.addf %2, %4 : vector<16x128xf32>
    %cst_5 = arith.constant 0.000000e+00 : f32
    %6 = vector.broadcast %cst_5 : f32 to vector<16x128xf32>
    %7 = arith.maximumf %5, %6 : vector<16x128xf32>
    %8 = arith.truncf %7 : vector<16x128xf32> to vector<16x128xbf16>
    %c0_6 = arith.constant 0 : index
    %c0_7 = arith.constant 0 : index
    %9 = vector.load %arg4[%c0_6, %c0_7] : memref<128x128xbf16, #tpu.memory_space<vmem>>, vector<128x128xbf16>
    %cst_8 = arith.constant dense<0.000000e+00> : vector<16x128xf32>
    %10 = tpu.matmul %8, %9, %cst_8 {dimension_numbers = #tpu.dot_dimension_numbers<[1], [0], [0], [1], [0, 0, 1, 1], [], []>} : vector<16x128xbf16>, vector<128x128xbf16>, vector<16x128xf32> -> vector<16x128xf32>
    %c0_9 = arith.constant 0 : index
    %c0_10 = arith.constant 0 : index
    %11 = vector.load %arg5[%c0_9, %c0_10] : memref<1x128xf32, #tpu.memory_space<vmem>>, vector<1x128xf32>
    %12 = vector.broadcast %11 : vector<1x128xf32> to vector<16x128xf32>
    %13 = arith.addf %10, %12 : vector<16x128xf32>
    %cst_11 = arith.constant 0.000000e+00 : f32
    %14 = vector.broadcast %cst_11 : f32 to vector<16x128xf32>
    %15 = arith.maximumf %13, %14 : vector<16x128xf32>
    %16 = arith.truncf %15 : vector<16x128xf32> to vector<16x128xbf16>
    %c0_12 = arith.constant 0 : index
    %c0_13 = arith.constant 0 : index
    %17 = vector.load %arg6[%c0_12, %c0_13] : memref<128x128xbf16, #tpu.memory_space<vmem>>, vector<128x128xbf16>
    %cst_14 = arith.constant dense<0.000000e+00> : vector<16x128xf32>
    %18 = tpu.matmul %16, %17, %cst_14 {dimension_numbers = #tpu.dot_dimension_numbers<[1], [0], [0], [1], [0, 0, 1, 1], [], []>} : vector<16x128xbf16>, vector<128x128xbf16>, vector<16x128xf32> -> vector<16x128xf32>
    %c0_15 = arith.constant 0 : index
    %c0_16 = arith.constant 0 : index
    %19 = vector.load %arg7[%c0_15, %c0_16] : memref<1x128xf32, #tpu.memory_space<vmem>>, vector<1x128xf32>
    %20 = vector.broadcast %19 : vector<1x128xf32> to vector<16x128xf32>
    %21 = arith.addf %18, %20 : vector<16x128xf32>
    %cst_17 = arith.constant 0.000000e+00 : f32
    %22 = vector.broadcast %cst_17 : f32 to vector<16x128xf32>
    %23 = arith.maximumf %21, %22 : vector<16x128xf32>
    %24 = arith.truncf %23 : vector<16x128xf32> to vector<16x128xbf16>
    %c0_18 = arith.constant 0 : index
    %c0_19 = arith.constant 0 : index
    %25 = vector.load %arg8[%c0_18, %c0_19] : memref<128x128xbf16, #tpu.memory_space<vmem>>, vector<128x128xbf16>
    %cst_20 = arith.constant dense<0.000000e+00> : vector<16x128xf32>
    %26 = tpu.matmul %24, %25, %cst_20 {dimension_numbers = #tpu.dot_dimension_numbers<[1], [0], [0], [1], [0, 0, 1, 1], [], []>} : vector<16x128xbf16>, vector<128x128xbf16>, vector<16x128xf32> -> vector<16x128xf32>
    %c0_21 = arith.constant 0 : index
    %c0_22 = arith.constant 0 : index
    %27 = vector.load %arg9[%c0_21, %c0_22] : memref<1x128xf32, #tpu.memory_space<vmem>>, vector<1x128xf32>
    %28 = vector.broadcast %27 : vector<1x128xf32> to vector<16x128xf32>
    %29 = arith.addf %26, %28 : vector<16x128xf32>
    %cst_23 = arith.constant dense<0xFF800000> : vector<16xf32>
    %30 = vector.multi_reduction <maximumf>, %29, %cst_23 [1] : vector<16x128xf32> to vector<16xf32>
    %31 = vector.shape_cast %30 : vector<16xf32> to vector<16x1xf32>
    %32 = vector.broadcast %31 : vector<16x1xf32> to vector<16x128xf32>
    %33 = arith.subf %29, %32 : vector<16x128xf32>
    %34 = math.exp %33 : vector<16x128xf32>
    %cst_24 = arith.constant dense<0.000000e+00> : vector<16xf32>
    %35 = vector.multi_reduction <add>, %34, %cst_24 [1] : vector<16x128xf32> to vector<16xf32>
    %36 = vector.shape_cast %35 : vector<16xf32> to vector<16x1xf32>
    %37 = tpu.reciprocal %36 {approx = true} : vector<16x1xf32> -> vector<16x1xf32>
    %38 = arith.mulf %36, %37 : vector<16x1xf32>
    %cst_25 = arith.constant 2.000000e+00 : f32
    %39 = vector.broadcast %cst_25 : f32 to vector<16x1xf32>
    %40 = arith.subf %39, %38 : vector<16x1xf32>
    %41 = arith.mulf %37, %40 : vector<16x1xf32>
    %42 = vector.broadcast %41 : vector<16x1xf32> to vector<16x128xf32>
    %43 = arith.mulf %34, %42 : vector<16x128xf32>
    %c0_26 = arith.constant 0 : index
    %c0_27 = arith.constant 0 : index
    %44 = vector.load %arg10[%c0_26, %c0_27] : memref<16x128xf32, #tpu.memory_space<vmem>>, vector<16x128xf32>
    tpu.vector_store %arg10[%c0_26, %c0_27], %43 {strides = array<i32>} : memref<16x128xf32, #tpu.memory_space<vmem>>, vector<16x128xf32>,
    return
  }
  func.func @transform_0(%arg0: i32) -> (i32, i32) {
    %c0_i32 = arith.constant 0 : i32
    %c0_i32_0 = arith.constant 0 : i32
    return %arg0, %c0_i32 : i32, i32
  }
  func.func @transform_1(%arg0: i32) -> (i32, i32) {
    %c0_i32 = arith.constant 0 : i32
    %c0_i32_0 = arith.constant 0 : i32
    %c0_i32_1 = arith.constant 0 : i32
    return %c0_i32, %c0_i32_0 : i32, i32
  }
  func.func @transform_2(%arg0: i32) -> (i32, i32) {
    %c0_i32 = arith.constant 0 : i32
    %c0_i32_0 = arith.constant 0 : i32
    %c0_i32_1 = arith.constant 0 : i32
    return %c0_i32, %c0_i32_0 : i32, i32
  }
  func.func @transform_3(%arg0: i32) -> (i32, i32) {
    %c0_i32 = arith.constant 0 : i32
    %c0_i32_0 = arith.constant 0 : i32
    %c0_i32_1 = arith.constant 0 : i32
    return %c0_i32, %c0_i32_0 : i32, i32
  }
  func.func @transform_4(%arg0: i32) -> (i32, i32) {
    %c0_i32 = arith.constant 0 : i32
    %c0_i32_0 = arith.constant 0 : i32
    %c0_i32_1 = arith.constant 0 : i32
    return %c0_i32, %c0_i32_0 : i32, i32
  }
  func.func @transform_5(%arg0: i32) -> (i32, i32) {
    %c0_i32 = arith.constant 0 : i32
    %c0_i32_0 = arith.constant 0 : i32
    %c0_i32_1 = arith.constant 0 : i32
    return %c0_i32, %c0_i32_0 : i32, i32
  }
  func.func @transform_6(%arg0: i32) -> (i32, i32) {
    %c0_i32 = arith.constant 0 : i32
    %c0_i32_0 = arith.constant 0 : i32
    %c0_i32_1 = arith.constant 0 : i32
    return %c0_i32, %c0_i32_0 : i32, i32
  }
  func.func @transform_7(%arg0: i32) -> (i32, i32) {
    %c0_i32 = arith.constant 0 : i32
    %c0_i32_0 = arith.constant 0 : i32
    %c0_i32_1 = arith.constant 0 : i32
    return %c0_i32, %c0_i32_0 : i32, i32
  }
  func.func @transform_8(%arg0: i32) -> (i32, i32) {
    %c0_i32 = arith.constant 0 : i32
    %c0_i32_0 = arith.constant 0 : i32
    %c0_i32_1 = arith.constant 0 : i32
    return %c0_i32, %c0_i32_0 : i32, i32
  }
  func.func @transform_9(%arg0: i32) -> (i32, i32) {
    %c0_i32 = arith.constant 0 : i32
    %c0_i32_0 = arith.constant 0 : i32
    return %arg0, %c0_i32 : i32, i32
  }
}

</mosaic_0001>

<bundles_post_ra>
// kernel: tpu_custom_call.1
= control target key start
LH: loop header
LB: loop body
LE: loop exit
PB: predicated region body
PF: predicated region fallthrough
CT: control target
= control target key end

     0   :  { %14 = vsyncpa [#allocation3], 0  ;;  %s1173_s0 = inlined_call_operand.hbm [shape: bf16[16,128], index: 0, kind: input, shape index: {}]   ;;  %s1174_s1 = inlined_call_operand.hbm [shape: bf16[128,128], index: 1, kind: input, shape index: {}]   ;;  %s1175_s2 = inlined_call_operand.vmem [shape: f32[1,128], index: 2, kind: input, shape index: {}]   ;;  %s1176_s3 = inlined_call_operand.hbm [shape: bf16[128,128], index: 3, kind: input, shape index: {}]   ;;  %s1177_s4 = inlined_call_operand.vmem [shape: f32[1,128], index: 4, kind: input, shape index: {}]   ;;  %s1178_s5 = inlined_call_operand.hbm [shape: bf16[128,128], index: 5, kind: input, shape index: {}]   ;;  %s1179_s6 = inlined_call_operand.vmem [shape: f32[1,128], index: 6, kind: input, shape index: {}]   ;;  %s1180_s7 = inlined_call_operand.hbm [shape: bf16[128,128], index: 7, kind: input, shape index: {}]   ;;  %s1181_s8 = inlined_call_operand.vmem [shape: f32[1,128], index: 8, kind: input, shape index: {}]   ;;  %s1182_s9 = inlined_call_operand.hbm [shape: f32[16,128], index: 9, kind: output, shape index: {}]  }
   0x1   :  { %15 = vsyncpa [#allocation6], 0 }
   0x2   :  { %16 = vsyncpa [#allocation9], 0 }
   0x3   :  { %17 = vsyncpa [#allocation4], 0  ;;  %s958_s30 = smov [#allocation5]   ;;  %s959_s11 = smov [#allocation8]  }
   0x4   :  { %s35_s10 = sshll.u32 %s958_s30, 4  ;;  %s63_s12 = sshll.u32 %s959_s11, 4  ;;  %s36_s10 = int_to_ptr.vmem [resolvable:$true] %s35_s10  ;;  %s1020_s12 = int_to_ptr.vmem [resolvable:$true] %s63_s12 }
   0x5   :  { %s818_s15 = scalar_lea.hbm %s1174_s1, 1024 }
   0x6   :  { %p819_p0 = scmp.ne.s32.totalorder %s1174_s1, %s818_s15  ;;  %p822_p1 = scmp.lt.u32.totalorder %s818_s15, %s1174_s1 }
   0x8   :  { %p824_p2 = pnand %p822_p1, %p819_p0 }
   0xa   :  { %827 = shalt.err (!%p824_p2)
}
   0xb   :  { %s828_s20 = scalar_lea.vmem %s36_s10, 1024  ;;  %p833_p4 = scmp.lt.s32.totalorder %s36_s10, %s36_s10 }
   0xc   :  { %p829_p3 = scmp.ne.s32.totalorder %s36_s10, %s828_s20  ;;  %p834_p5 = scmp.lt.s32.totalorder %s828_s20, %s828_s20 }
   0xe   :  { %p835_p6 = por %p834_p5, %p833_p4 }
  0x10   :  { %p836_p7 = pnand %p835_p6, %p829_p3 }
  0x12   :  { %839 = shalt.err (!%p836_p7)
}
  0x13   :  { %s960_s21 = smov 64   ;;  %s961_s22 = smov 4  }
  0x14   :  { %41 = dma.hbm_to_vmem [thread:$0]  %s1174_s1, 1024, %s36_s10, [#allocation6], %s960_s21, %s960_s21, %s961_s22  }
  0x15   :  { %s840_s27 = scalar_lea.hbm %s1178_s5, 1024 }
  0x16   :  { %p841_p8 = scmp.ne.s32.totalorder %s1178_s5, %s840_s27  ;;  %p844_p9 = scmp.lt.u32.totalorder %s840_s27, %s1178_s5 }
  0x18   :  { %p846_p10 = pnand %p844_p9, %p841_p8 }
  0x1a   :  { %849 = shalt.err (!%p846_p10)
}
  0x1b   :  { %s850_s13 = scalar_lea.vmem %s1020_s12, 1024  ;;  %p855_p12 = scmp.lt.s32.totalorder %s1020_s12, %s1020_s12 }
  0x1c   :  { %p851_p11 = scmp.ne.s32.totalorder %s1020_s12, %s850_s13  ;;  %p856_p13 = scmp.lt.s32.totalorder %s850_s13, %s850_s13 }
  0x1e   :  { %p857_p0 = por %p856_p13, %p855_p12 }
  0x20   :  { %p858_p1 = pnand %p857_p0, %p851_p11 }
  0x22   :  { %861 = shalt.err (!%p858_p1)
}
  0x23   :  { %69 = dma.hbm_to_vmem [thread:$0]  %s1178_s5, 1024, %s1020_s12, [#allocation9], %s960_s21, %s960_s21, %s961_s22  }
  0x24   :  { %s962_s14 = smov [#allocation2]   ;;  %s963_s16 = smov [#allocation7]  }
  0x25   :  { %s23_s15 = sshll.u32 %s962_s14, 4  ;;  %s49_s17 = sshll.u32 %s963_s16, 4  ;;  %s24_s15 = int_to_ptr.vmem [resolvable:$true] %s23_s15  ;;  %s1057_s17 = int_to_ptr.vmem [resolvable:$true] %s49_s17 }
  0x26   :  { %s862_s20 = scalar_lea.hbm %s1173_s0, 128 }
  0x27   :  { %p863_p2 = scmp.ne.s32.totalorder %s1173_s0, %s862_s20  ;;  %p866_p3 = scmp.lt.u32.totalorder %s862_s20, %s1173_s0 }
  0x29   :  { %p868_p4 = pnand %p866_p3, %p863_p2 }
  0x2b   :  { %871 = shalt.err (!%p868_p4)
}
  0x2c   :  { %s872_s5 = scalar_lea.vmem %s24_s15, 128  ;;  %p877_p6 = scmp.lt.s32.totalorder %s24_s15, %s24_s15 }
  0x2d   :  { %p873_p5 = scmp.ne.s32.totalorder %s24_s15, %s872_s5  ;;  %p878_p7 = scmp.lt.s32.totalorder %s872_s5, %s872_s5 }
  0x2f   :  { %p879_p8 = por %p878_p7, %p877_p6 }
  0x31   :  { %p880_p9 = pnand %p879_p8, %p873_p5 }
  0x33   :  { %883 = shalt.err (!%p880_p9)
}
  0x34   :  { %29 = dma.hbm_to_vmem [thread:$0]  %s1173_s0, 128, %s24_s15, [#allocation3], %s960_s21, %s960_s21, %s961_s22  }
  0x35   :  { %s884_s30 = scalar_lea.hbm %s1176_s3, 1024 }
  0x36   :  { %p885_p10 = scmp.ne.s32.totalorder %s1176_s3, %s884_s30  ;;  %p888_p11 = scmp.lt.u32.totalorder %s884_s30, %s1176_s3 }
  0x38   :  { %p890_p12 = pnand %p888_p11, %p885_p10 }
  0x3a   :  { %893 = shalt.err (!%p890_p12)
}
  0x3b   :  { %s894_s14 = scalar_lea.vmem %s1057_s17, 1024  ;;  %p899_p0 = scmp.lt.s32.totalorder %s1057_s17, %s1057_s17 }
  0x3c   :  { %p895_p13 = scmp.ne.s32.totalorder %s1057_s17, %s894_s14  ;;  %p900_p1 = scmp.lt.s32.totalorder %s894_s14, %s894_s14 }
  0x3e   :  { %p901_p2 = por %p900_p1, %p899_p0 }
  0x40   :  { %p902_p3 = pnand %p901_p2, %p895_p13 }
  0x42   :  { %905 = shalt.err (!%p902_p3)
}
  0x43   :  { %55 = dma.hbm_to_vmem [thread:$0]  %s1176_s3, 1024, %s1057_s17, [#allocation6], %s960_s21, %s960_s21, %s961_s22  }
  0x44   :  { %s964_s16 = smov [#allocation10]   ;;  %s906_s23 = scalar_lea.hbm %s1180_s7, 1024 }
  0x45   :  { %s77_s18 = sshll.u32 %s964_s16, 4  ;;  %p907_p4 = scmp.ne.s32.totalorder %s1180_s7, %s906_s23  ;;  %s78_s18 = int_to_ptr.vmem [resolvable:$true] %s77_s18 }
  0x46   :  { %p910_p5 = scmp.lt.u32.totalorder %s906_s23, %s1180_s7 }
  0x48   :  { %p912_p6 = pnand %p910_p5, %p907_p4 }
  0x4a   :  { %915 = shalt.err (!%p912_p6)
}
  0x4b   :  { %s916_s12 = scalar_lea.vmem %s78_s18, 1024  ;;  %p921_p8 = scmp.lt.s32.totalorder %s78_s18, %s78_s18 }
  0x4c   :  { %p917_p7 = scmp.ne.s32.totalorder %s78_s18, %s916_s12  ;;  %p922_p9 = scmp.lt.s32.totalorder %s916_s12, %s916_s12 }
  0x4e   :  { %p923_p10 = por %p922_p9, %p921_p8 }
  0x50   :  { %p924_p11 = pnand %p923_p10, %p917_p7 }
  0x52   :  { %927 = shalt.err (!%p924_p11)
}
  0x53   :  { %83 = dma.hbm_to_vmem [thread:$0]  %s1180_s7, 1024, %s78_s18, [#allocation9], %s960_s21, %s960_s21, %s961_s22  }
  0x54   :  { %950 = dma.done.wait [#allocation3], 128  }
  0x55   :  { %951 = vsyncadd [#allocation3], 4294967168 }
  0x56   :  { %952 = dma.done.wait [#allocation6], 2048  }
  0x57   :  { %953 = vsyncadd [#allocation6], 4294965248 }
  0x58   :  { %954 = dma.done.wait [#allocation9], 2048  }
  0x59   :  { %955 = vsyncadd [#allocation9], 4294965248  ;;  %v965_v0 = vmov 0.0   ;;  %vm966_vm0 = vmmov 0   ;;  %v777_v1 = vld [vmem:[#allocation5] sm:$0xff]   ;;  %v778_v2 = vld [vmem:[#allocation5 + $0x8] sm:$0xff]  }
  0x5a   :  { %685 = vmatprep.subr.bf16.mxu0 %v965_v0  ;;  %701 = vmatprep.mubr.msk.bf16.mxu0 %vm966_vm0, %v965_v0  ;;  %v779_v3 = vld [vmem:[#allocation5 + $0x10] sm:$0xff]   ;;  %v786_v4 = vld [vmem:[#allocation7] sm:$0xff]   ;;  %v780_v5 = vld [vmem:[#allocation5 + $0x18] sm:$0xff]  }
  0x5b   :  { %705 = vmatprep.subr.bf16.mxu1 %v965_v0  ;;  %721 = vmatprep.mubr.msk.bf16.mxu1 %vm966_vm0, %v965_v0  ;;  %v787_v6 = vld [vmem:[#allocation7 + $0x8] sm:$0xff]   ;;  %v781_v7 = vld [vmem:[#allocation5 + $0x20] sm:$0xff]   ;;  %v788_v8 = vld [vmem:[#allocation7 + $0x10] sm:$0xff]  }
  0x5c   :  { %686 = vmatpush3.bf16.msra.mxu0 %v777_v1  ;;  %706 = vmatpush3.bf16.msra.mxu1 %v786_v4  ;;  %v782_v9 = vld [vmem:[#allocation5 + $0x28] sm:$0xff]   ;;  %v789_v10 = vld [vmem:[#allocation7 + $0x18] sm:$0xff]   ;;  %v783_v11 = vld [vmem:[#allocation5 + $0x30] sm:$0xff]  }
  0x5d   :  { %687 = vmatprep.subr.bf16.mxu0 %v965_v0  ;;  %707 = vmatprep.subr.bf16.mxu1 %v965_v0  ;;  %v790_v12 = vld [vmem:[#allocation7 + $0x20] sm:$0xff]   ;;  %v784_v13 = vld [vmem:[#allocation5 + $0x38] sm:$0xff]   ;;  %v791_v14 = vld [vmem:[#allocation7 + $0x28] sm:$0xff]  }
  0x5e   :  { %v785_v15 = vld [vmem:[#allocation2] sm:$0xff]   ;;  %v792_v16 = vld [vmem:[#allocation7 + $0x30] sm:$0xff]   ;;  %v794_v18 = vld [vmem:[#allocation8] sm:$0xff]  }
  0x5f   :  { %v793_v17 = vld [vmem:[#allocation7 + $0x38] sm:$0xff]   ;;  %v795_v19 = vld [vmem:[#allocation8 + $0x8] sm:$0xff]   ;;  %v796_v20 = vld [vmem:[#allocation8 + $0x10] sm:$0xff]  }
  0x60   :  { %688 = vmatpush3.bf16.msra.mxu0 %v778_v2  ;;  %708 = vmatpush3.bf16.msra.mxu1 %v787_v6  ;;  %v797_v21 = vld [vmem:[#allocation8 + $0x18] sm:$0xff]   ;;  %v798_v22 = vld [vmem:[#allocation8 + $0x20] sm:$0xff]   ;;  %v799_v23 = vld [vmem:[#allocation8 + $0x28] sm:$0xff]  }
  0x61   :  { %689 = vmatprep.subr.bf16.mxu0 %v965_v0  ;;  %709 = vmatprep.subr.bf16.mxu1 %v965_v0  ;;  %v612_v24 = vld [vmem:[%s1175_s2] ss:$0 sm:$0xff]  ;;  %v800_v34 = vld [vmem:[#allocation8 + $0x30] sm:$0xff]   ;;  %v802_v36 = vld [vmem:[#allocation10] sm:$0xff]  }
  0x62   :  { %v801_v35 = vld [vmem:[#allocation8 + $0x38] sm:$0xff]   ;;  %v803_v37 = vld [vmem:[#allocation10 + $0x8] sm:$0xff]   ;;  %v804_v38 = vld [vmem:[#allocation10 + $0x10] sm:$0xff]  }
  0x63   :  { %v805_v39 = vld [vmem:[#allocation10 + $0x18] sm:$0xff]   ;;  %v806_v40 = vld [vmem:[#allocation10 + $0x20] sm:$0xff]   ;;  %v807_v41 = vld [vmem:[#allocation10 + $0x28] sm:$0xff]  }
  0x64   :  { %690 = vmatpush3.bf16.msra.mxu0 %v779_v3  ;;  %710 = vmatpush3.bf16.msra.mxu1 %v788_v8  ;;  %v622_v42 = vld [vmem:[%s1177_s4] ss:$0 sm:$0xff]  ;;  %v808_v52 = vld [vmem:[#allocation10 + $0x30] sm:$0xff]  }
  0x65   :  { %691 = vmatprep.subr.bf16.mxu0 %v965_v0  ;;  %711 = vmatprep.subr.bf16.mxu1 %v965_v0  ;;  %v809_v53 = vld [vmem:[#allocation10 + $0x38] sm:$0xff]  }
  0x66   :  { %v631_v54 = vld [vmem:[%s1179_s6] ss:$0 sm:$0xff]  ;;  %s967_s6 = smov [#allocation11]  }
  0x68   :  { %692 = vmatpush3.bf16.msra.mxu0 %v780_v5  ;;  %712 = vmatpush3.bf16.msra.mxu1 %v789_v10 }
  0x69   :  { %693 = vmatprep.subr.bf16.mxu0 %v965_v0  ;;  %713 = vmatprep.subr.bf16.mxu1 %v965_v0 }
  0x6c   :  { %694 = vmatpush3.bf16.msra.mxu0 %v781_v7  ;;  %714 = vmatpush3.bf16.msra.mxu1 %v790_v12 }
  0x6d   :  { %695 = vmatprep.subr.bf16.mxu0 %v965_v0  ;;  %715 = vmatprep.subr.bf16.mxu1 %v965_v0 }
  0x70   :  { %696 = vmatpush3.bf16.msra.mxu0 %v782_v9  ;;  %716 = vmatpush3.bf16.msra.mxu1 %v791_v14 }
  0x71   :  { %697 = vmatprep.subr.bf16.mxu0 %v965_v0  ;;  %717 = vmatprep.subr.bf16.mxu1 %v965_v0 }
  0x74   :  { %698 = vmatpush3.bf16.msra.mxu0 %v783_v11  ;;  %718 = vmatpush3.bf16.msra.mxu1 %v792_v16 }
  0x75   :  { %699 = vmatprep.subr.bf16.mxu0 %v965_v0  ;;  %719 = vmatprep.subr.bf16.mxu1 %v965_v0 }
  0x78   :  { %700 = vmatpush3.bf16.msra.mxu0 %v784_v13  ;;  %720 = vmatpush3.bf16.msra.mxu1 %v793_v17 }
  0x79   :  { %725 = vmatprep.subr.bf16.mxu0 %v965_v0  ;;  %745 = vmatprep.subr.bf16.mxu1 %v965_v0 }
  0x7b   :  { %702 = vmatmul.mubr.bf16.vlgmr.msra.gmra.mrb[0].mxu0 %v785_v15 }
  0x7c   :  { %741 = vmatprep.mubr.msk.bf16.mxu0 %vm966_vm0, %v965_v0  ;;  %726 = vmatpush3.bf16.msra.mxu0 %v794_v18 }
  0x7d   :  { %727 = vmatprep.subr.bf16.mxu0 %v965_v0 }
  0x80   :  { %728 = vmatpush3.bf16.msra.mxu0 %v795_v19 }
  0x81   :  { %729 = vmatprep.subr.bf16.mxu0 %v965_v0 }
  0x84   :  { %730 = vmatpush3.bf16.msra.mxu0 %v796_v20 }
  0x85   :  { %731 = vmatprep.subr.bf16.mxu0 %v965_v0 }
  0x88   :  { %732 = vmatpush3.bf16.msra.mxu0 %v797_v21 }
  0x89   :  { %733 = vmatprep.subr.bf16.mxu0 %v965_v0 }
  0x8c   :  { %734 = vmatpush3.bf16.msra.mxu0 %v798_v22 }
  0x8d   :  { %735 = vmatprep.subr.bf16.mxu0 %v965_v0 }
  0x90   :  { %736 = vmatpush3.bf16.msra.mxu0 %v799_v23 }
  0x91   :  { %737 = vmatprep.subr.bf16.mxu0 %v965_v0 }
  0x94   :  { %738 = vmatpush3.bf16.msra.mxu0 %v800_v34 }
  0x95   :  { %739 = vmatprep.subr.bf16.mxu0 %v965_v0 }
  0x98   :  { %740 = vmatpush3.bf16.msra.mxu0 %v801_v35 }
 0x14e   :  { %v215_v25 = vpop.f32.mrb[0].mxu0 }
 0x14f   :  { %v216_v26 = vadd.f32 %v612_v24, %v215_v25  ;;  %v703_v27 = vpop.f32.mrb[1].mxu0 }
 0x150   :  { %v218_v28 = vpop.f32.mrb[2].mxu0 }
 0x151   :  { %v219_v29 = vadd.f32 %v612_v24, %v218_v28  ;;  %v704_v30 = vpop.f32.mrb[3].mxu0  ;;  %v222_v31 = vmax.f32 %v216_v26, 0.0 }
 0x153   :  { %v223_v32 = vmax.f32 %v219_v29, 0.0 }
 0x155   :  { %v224_v33 = vpack.c.bf16 %v223_v32, %v222_v31 }
 0x157   :  { %722 = vmatmul.mubr.bf16.vlgmr.msra.gmra.mrb[0].mxu1 %v224_v33 }
 0x158   :  { %761 = vmatprep.mubr.msk.bf16.mxu1 %vm966_vm0, %v965_v0  ;;  %746 = vmatpush3.bf16.msra.mxu1 %v802_v36 }
 0x159   :  { %747 = vmatprep.subr.bf16.mxu1 %v965_v0 }
 0x15c   :  { %748 = vmatpush3.bf16.msra.mxu1 %v803_v37 }
 0x15d   :  { %749 = vmatprep.subr.bf16.mxu1 %v965_v0 }
 0x160   :  { %750 = vmatpush3.bf16.msra.mxu1 %v804_v38 }
 0x161   :  { %751 = vmatprep.subr.bf16.mxu1 %v965_v0 }
 0x164   :  { %752 = vmatpush3.bf16.msra.mxu1 %v805_v39 }
 0x165   :  { %753 = vmatprep.subr.bf16.mxu1 %v965_v0 }
 0x168   :  { %754 = vmatpush3.bf16.msra.mxu1 %v806_v40 }
 0x169   :  { %755 = vmatprep.subr.bf16.mxu1 %v965_v0 }
 0x16c   :  { %756 = vmatpush3.bf16.msra.mxu1 %v807_v41 }
 0x16d   :  { %757 = vmatprep.subr.bf16.mxu1 %v965_v0 }
 0x170   :  { %758 = vmatpush3.bf16.msra.mxu1 %v808_v52 }
 0x171   :  { %759 = vmatprep.subr.bf16.mxu1 %v965_v0  ;;  %v640_v0 = vld [vmem:[%s1181_s8] ss:$0 sm:$0xff]  ;;  %s598_s8 = sshll.u32 %s967_s6, 4  ;;  %s599_s8 = int_to_ptr.vmem [resolvable:$true] %s598_s8 }
 0x172   :  { %s928_s30 = scalar_lea.vmem %s599_s8, 256  ;;  %p933_p13 = scmp.lt.s32.totalorder %s599_s8, %s599_s8 }
 0x173   :  { %p929_p12 = scmp.ne.s32.totalorder %s599_s8, %s928_s30  ;;  %p934_p0 = scmp.lt.s32.totalorder %s928_s30, %s928_s30 }
 0x174   :  { %760 = vmatpush3.bf16.msra.mxu1 %v809_v53 }
 0x175   :  { %p935_p1 = por %p934_p0, %p933_p13 }
 0x177   :  { %p936_p2 = pnand %p935_p1, %p929_p12 }
 0x22a   :  { %v330_v43 = vpop.f32.mrb[0].mxu1 }
 0x22b   :  { %v331_v44 = vadd.f32 %v622_v42, %v330_v43  ;;  %v723_v45 = vpop.f32.mrb[1].mxu1 }
 0x22c   :  { %v333_v46 = vpop.f32.mrb[2].mxu1 }
 0x22d   :  { %v334_v47 = vadd.f32 %v622_v42, %v333_v46  ;;  %v724_v48 = vpop.f32.mrb[3].mxu1  ;;  %v337_v49 = vmax.f32 %v331_v44, 0.0 }
 0x22f   :  { %v338_v50 = vmax.f32 %v334_v47, 0.0 }
 0x231   :  { %v339_v51 = vpack.c.bf16 %v338_v50, %v337_v49 }
 0x233   :  { %742 = vmatmul.mubr.bf16.vlgmr.msra.gmra.mrb[4].mxu0 %v339_v51 }
 0x306   :  { %v445_v55 = vpop.f32.mrb[4].mxu0 }
 0x307   :  { %v446_v56 = vadd.f32 %v631_v54, %v445_v55  ;;  %v743_v57 = vpop.f32.mrb[5].mxu0 }
 0x308   :  { %v448_v58 = vpop.f32.mrb[6].mxu0 }
 0x309   :  { %v449_v59 = vadd.f32 %v631_v54, %v448_v58  ;;  %v744_v60 = vpop.f32.mrb[7].mxu0  ;;  %v452_v61 = vmax.f32 %v446_v56, 0.0 }
 0x30b   :  { %v453_v62 = vmax.f32 %v449_v59, 0.0 }
 0x30d   :  { %v454_v63 = vpack.c.bf16 %v453_v62, %v452_v61 }
 0x30f   :  { %762 = vmatmul.mubr.bf16.vlgmr.msra.gmra.mrb[4].mxu1 %v454_v63 }
 0x3e2   :  { %v560_v1 = vpop.f32.mrb[4].mxu1 }
 0x3e3   :  { %v561_v2 = vadd.f32 %v640_v0, %v560_v1  ;;  %v763_v3 = vpop.f32.mrb[5].mxu1 }
 0x3e4   :  { %v563_v4 = vpop.f32.mrb[6].mxu1 }
 0x3e5   :  { %567 = vmax.xlane.f32.xlu0 %v561_v2  ;;  %v764_v5 = vpop.f32.mrb[7].mxu1  ;;  %v564_v6 = vadd.f32 %v640_v0, %v563_v4 }
 0x3e9   :  { %569 = vmax.xlane.f32.xlu0 %v564_v6 }
 0x472   :  { %v568_v7 = vpop.xlane.xlu0 %567 }
 0x473   :  { %v571_v8 = vsub.f32 %v561_v2, %v568_v7 }
 0x475   :  { %v573_v9 = vmul.f32 1.442695, %v571_v8 }
 0x476   :  { %v570_v10 = vpop.xlane.xlu0 %569 }
 0x477   :  { %810 = vpow2.f32 %v573_v9  ;;  %v572_v11 = vsub.f32 %v564_v6, %v570_v10 }
 0x479   :  { %v575_v12 = vmul.f32 1.442695, %v572_v11 }
 0x47b   :  { %812 = vpow2.f32 %v575_v12 }
 0x481   :  { %v811_v13 = vpop.eup %810 }
 0x482   :  { %577 = vadd.xlane.f32.xlu1 %v811_v13 }
 0x485   :  { %v813_v14 = vpop.eup %812 }
 0x486   :  { %579 = vadd.xlane.f32.xlu1 %v813_v14 }
 0x50f   :  { %v578_v15 = vpop.xlane.xlu1 %577 }
 0x510   :  { %814 = vrcp.f32 %v578_v15 }
 0x513   :  { %v580_v16 = vpop.xlane.xlu1 %579 }
 0x514   :  { %816 = vrcp.f32 %v580_v16 }
 0x51a   :  { %v815_v17 = vpop.eup %814 }
 0x51b   :  { %v583_v18 = vmul.f32 %v815_v17, %v578_v15 }
 0x51d   :  { %v585_v19 = vsub.f32 2.0, %v583_v18 }
 0x51e   :  { %v817_v20 = vpop.eup %816 }
 0x51f   :  { %v587_v21 = vmul.f32 %v815_v17, %v585_v19  ;;  %v584_v22 = vmul.f32 %v817_v20, %v580_v16 }
 0x521   :  { %v589_v23 = vmul.f32 %v811_v13, %v587_v21  ;;  %v586_v24 = vsub.f32 2.0, %v584_v22 }
 0x523   :  { %591 = vst [vmem:[#allocation11] sm:$0xff] %v589_v23  ;;  %v588_v25 = vmul.f32 %v817_v20, %v586_v24 }
 0x525   :  { %v590_v26 = vmul.f32 %v813_v14, %v588_v25 }
 0x527   :  { %592 = vst [vmem:[#allocation11 + $0x8] sm:$0xff] %v590_v26 }
 0x528   :  { %939 = shalt.err (!%p936_p2)
}
 0x529   :  { %s940_s1 = scalar_lea.hbm %s1182_s9, 256 }
 0x52a   :  { %p941_p3 = scmp.ne.s32.totalorder %s1182_s9, %s940_s1  ;;  %p944_p4 = scmp.lt.u32.totalorder %s940_s1, %s1182_s9 }
 0x52c   :  { %p946_p5 = pnand %p944_p4, %p941_p3 }
 0x52e   :  { %949 = shalt.err (!%p946_p5)
}
 0x52f   :  { %s968_s16 = smov 128   ;;  %s969_s18 = smov 8  }
 0x530   :  { %604 = dma.vmem_to_hbm [thread:$0]  %s599_s8, 256, %s1182_s9, [#allocation4], %s968_s16, %s968_s16, %s969_s18  }
 0x531   :  { %956 = dma.done.wait [#allocation4], 256  }
 0x532   :  { %957 = vsyncadd [#allocation4], 4294967040 }
 0x533   :  { %608 = vsyncpa [#allocation3], 1 }
 0x534   :  { %609 = vsyncpa [#allocation6], 1 }
 0x535   :  { %610 = vsyncpa [#allocation9], 1 }
 0x536   :  { %611 = vsyncpa [#allocation4], 1 }

</bundles_post_ra>
